<compile_context>
chip_gen: v7x
topology: tpu7x:2x2x1
jax: 0.10.0
libtpu: 0.0.40
codegen_flags: <defaults>
</compile_context>

<pallas_src>
import numpy as np
import jax
import jax.numpy as jnp
from jax.experimental import pallas as pl
from jax.experimental.pallas import tpu as pltpu


def _round_up(x, m):
    return ((x + m - 1) // m) * m


def complex_linear_kernel(x_ref, wr_ref, wi_ref, brf_ref, bif_ref, out_ref):
    """x_ref: (2, tm, F_in); wr/wi: (F_in, tn); brf/bif: (1, tn) folded biases (f32);
    out_ref: (2, tm, tn)."""
    tm = x_ref.shape[1]
    f_in = x_ref.shape[2]

    # Stack [r; i] along M -> a single MXU stream through wr (pushed once).
    ri = x_ref[...].reshape(2 * tm, f_in)                       # (2*tm, F_in)
    wr = wr_ref[...]                                            # (F_in, tn)
    wi = wi_ref[...]                                            # (F_in, tn)

    lr = jnp.dot(ri, wr, preferred_element_type=jnp.float32)    # [r@wr ; i@wr]
    li_i = jnp.dot(ri[tm:], wi, preferred_element_type=jnp.float32)  # i@wi

    # Folded biases: brf = br - bi, bif = br + bi  (added once, in f32).
    real = lr[:tm] - li_i + brf_ref[...]
    imag = lr[tm:] + li_i + bif_ref[...]   # faithful to reference: uses `i` twice

    out_ref[0] = real.astype(out_ref.dtype)
    out_ref[1] = imag.astype(out_ref.dtype)


def complex_linear(x, w_real, w_imag, b_real, b_imag, *,
                   tm=256, tn=512, compute_dtype=None, out_dtype=None):
    """x: (N, 2, F_in); w_*: (F_out, F_in) torch layout; b_*: (F_out,).
    Returns (N, 2, F_out) — same layout as the PyTorch module."""
    N, two, f_in = x.shape
    assert two == 2, "Expected real/imag in dim=1."
    f_out = w_real.shape[0]

    compute_dtype = jnp.dtype(compute_dtype) if compute_dtype is not None else jnp.dtype(x.dtype)
    out_dtype = jnp.dtype(out_dtype) if out_dtype is not None else jnp.dtype(x.dtype)

    # --- wrapper-side layout plumbing (static / once per call, outside the kernel) ---
    # (N, 2, F_in) -> (2, N, F_in): real/imag on the leading dim.
    x2 = jnp.transpose(jnp.asarray(x), (1, 0, 2)).astype(compute_dtype)
    # torch (F_out, F_in) -> (F_in, F_out) so the kernel does x @ W^T without transposing.
    wr_t = jnp.asarray(w_real).T.astype(compute_dtype)
    wi_t = jnp.asarray(w_imag).T.astype(compute_dtype)
    # Folded biases, kept in f32 for the accumulator-precision add.
    br = jnp.asarray(b_real, jnp.float32)
    bi = jnp.asarray(b_imag, jnp.float32)
    b_real_f = (br - bi).reshape(1, f_out)
    b_imag_f = (br + bi).reshape(1, f_out)

    # --- tile sizes aligned to the (8, 128) vreg tiling, clipped to problem size ---
    tm = int(min(tm, _round_up(N, 8)))
    tn = int(min(tn, _round_up(f_out, 128)))
    n_pad = _round_up(N, tm)
    f_out_pad = _round_up(f_out, tn)

    if n_pad != N:
        x2 = jnp.pad(x2, ((0, 0), (0, n_pad - N), (0, 0)))
    if f_out_pad != f_out:
        pad_c = ((0, 0), (0, f_out_pad - f_out))
        wr_t = jnp.pad(wr_t, pad_c)
        wi_t = jnp.pad(wi_t, pad_c)
        b_real_f = jnp.pad(b_real_f, pad_c)
        b_imag_f = jnp.pad(b_imag_f, pad_c)

    # grid = (F_out tiles, N tiles): weights indexed only by j -> resident across
    # the inner N axis (no re-DMA); activations/output stream over N.
    grid = (f_out_pad // tn, n_pad // tm)

    in_specs = [
        pl.BlockSpec((2, tm, f_in), lambda j, i: (0, i, 0)),   # x        (2, tm, F_in)
        pl.BlockSpec((f_in, tn),    lambda j, i: (0, j)),      # wr^T     (F_in, tn)
        pl.BlockSpec((f_in, tn),    lambda j, i: (0, j)),      # wi^T     (F_in, tn)
        pl.BlockSpec((1, tn),       lambda j, i: (0, j)),      # br - bi  (1, tn)
        pl.BlockSpec((1, tn),       lambda j, i: (0, j)),      # br + bi  (1, tn)
    ]
    out_specs = pl.BlockSpec((2, tm, tn), lambda j, i: (0, i, j))

    # VMEM budget: double-buffered tiles + slack, clamped to sane scoped limits.
    in_item = compute_dtype.itemsize
    tile_bytes = (2 * tm * f_in + 2 * f_in * tn) * in_item \
                 + 2 * tm * tn * out_dtype.itemsize + 4 * tn * 4
    vmem_limit = int(min(max(2 * tile_bytes + (4 << 20), 32 << 20), 112 << 20))

    out = pl.pallas_call(
        complex_linear_kernel,
        out_shape=jax.ShapeDtypeStruct((2, n_pad, f_out_pad), out_dtype),
        grid=grid,
        in_specs=in_specs,
        out_specs=out_specs,
        compiler_params=pltpu.CompilerParams(
            dimension_semantics=("parallel", "parallel"),
            vmem_limit_bytes=vmem_limit,
        ),
    )(x2, wr_t, wi_t, b_real_f, b_imag_f)

    out = out[:, :N, :f_out]                 # strip padding
    return jnp.transpose(out, (1, 0, 2))     # back to (N, 2, F_out)


def init_complex_linear_params(key, in_features, out_features):
    """Deterministic re-implementation of ComplexInitializer(method='kaiming').

    Weight shape follows torch.nn.Linear: (out_features, in_features), fan_in = in_features.
    Rayleigh(scale=mode) magnitude, uniform(-pi, pi) phase.  Biases keep nn.Linear's
    default uniform(-1/sqrt(fan_in), 1/sqrt(fan_in)) init (not overwritten by the
    state-dict load in the reference module)."""
    k_mag, k_phase, k_br, k_bi = jax.random.split(key, 4)
    shape = (out_features, in_features)
    fan_in = in_features
    mode = 1.0 / np.sqrt(fan_in)

    u = jax.random.uniform(k_mag, shape, jnp.float32, minval=1e-7, maxval=1.0)
    magnitude = mode * jnp.sqrt(-2.0 * jnp.log(u))   # Rayleigh via inverse CDF
    phase = jax.random.uniform(k_phase, shape, jnp.float32, minval=-np.pi, maxval=np.pi)
    w_real = magnitude * jnp.cos(phase)
    w_imag = magnitude * jnp.sin(phase)

    bound = 1.0 / np.sqrt(fan_in)
    b_real = jax.random.uniform(k_br, (out_features,), jnp.float32, -bound, bound)
    b_imag = jax.random.uniform(k_bi, (out_features,), jnp.float32, -bound, bound)
    return w_real, w_imag, b_real, b_imag


def complex_linear_ref(x, w_real, w_imag, b_real, b_imag):
    """Pure-JAX reference mirroring the PyTorch forward (including `i` used twice)."""
    r = x[:, 0, :]
    i = x[:, 1, :]
    lin_real = lambda t: t @ w_real.T + b_real
    lin_imag = lambda t: t @ w_imag.T + b_imag
    real = lin_real(r) - lin_imag(i)
    imag = lin_real(i) + lin_imag(i)
    return jnp.stack([real, imag], axis=1)


if __name__ == "__main__":
    key = jax.random.PRNGKey(0)
    k_x, k_p = jax.random.split(key)

    # Small, aligned case.
    N, F_IN, F_OUT = 8, 32, 32
    x = jax.random.normal(k_x, (N, 2, F_IN), jnp.float32)
    w_real, w_imag, b_real, b_imag = init_complex_linear_params(k_p, F_IN, F_OUT)

    out = jax.block_until_ready(complex_linear(x, w_real, w_imag, b_real, b_imag))
    ref = complex_linear_ref(x, w_real, w_imag, b_real, b_imag)
    np.testing.assert_allclose(np.asarray(out), np.asarray(ref), rtol=1e-5, atol=1e-5)

    # Non-aligned case: exercises the N / F_out padding path.
    N2, F_IN2, F_OUT2 = 10, 40, 96
    x2 = jax.random.normal(k_x, (N2, 2, F_IN2), jnp.float32)
    w2r, w2i, b2r, b2i = init_complex_linear_params(k_p, F_IN2, F_OUT2)
    out2 = jax.block_until_ready(complex_linear(x2, w2r, w2i, b2r, b2i))
    ref2 = complex_linear_ref(x2, w2r, w2i, b2r, b2i)
    np.testing.assert_allclose(np.asarray(out2), np.asarray(ref2), rtol=1e-4, atol=1e-4)

    # bf16 MXU inputs with f32 accumulation (throughput path) — looser tolerance.
    out_bf16 = jax.block_until_ready(
        complex_linear(x, w_real, w_imag, b_real, b_imag, compute_dtype=jnp.bfloat16))
    np.testing.assert_allclose(np.asarray(out_bf16), np.asarray(ref), rtol=5e-2, atol=5e-2)

    print("KERNEL_OK")
</pallas_src>

<mosaic_0001>
module attributes {stable_mosaic.version = 11 : i64} {
  func.func @complex_linear_kernel(%arg0: i32, %arg1: i32, %arg2: memref<2x8x32xf32, #tpu.memory_space<vmem>>, %arg3: memref<32x128xf32, #tpu.memory_space<vmem>>, %arg4: memref<32x128xf32, #tpu.memory_space<vmem>>, %arg5: memref<1x128xf32, #tpu.memory_space<vmem>>, %arg6: memref<1x128xf32, #tpu.memory_space<vmem>>, %arg7: memref<2x8x128xf32, #tpu.memory_space<vmem>>) attributes {dimension_semantics = [#tpu.dimension_semantics<parallel>, #tpu.dimension_semantics<parallel>], iteration_bounds = array<i64: 1, 1>, scalar_prefetch = 0 : i64, scratch_operands = 0 : i64, tpu.core_type = #tpu.core_type<tc>, window_params = [{transform_indices = @transform_0, window_bounds = array<i64: 2, 8, 32>}, {transform_indices = @transform_1, window_bounds = array<i64: 32, 128>}, {transform_indices = @transform_2, window_bounds = array<i64: 32, 128>}, {transform_indices = @transform_3, window_bounds = array<i64: 1, 128>}, {transform_indices = @transform_4, window_bounds = array<i64: 1, 128>}, {transform_indices = @transform_5, window_bounds = array<i64: 2, 8, 128>}]} {
    %c0 = arith.constant 0 : index
    %c0_0 = arith.constant 0 : index
    %c0_1 = arith.constant 0 : index
    %0 = vector.load %arg2[%c0, %c0_0, %c0_1] : memref<2x8x32xf32, #tpu.memory_space<vmem>>, vector<2x8x32xf32>
    %1 = vector.shape_cast %0 : vector<2x8x32xf32> to vector<16x32xf32>
    %c0_2 = arith.constant 0 : index
    %c0_3 = arith.constant 0 : index
    %2 = vector.load %arg3[%c0_2, %c0_3] : memref<32x128xf32, #tpu.memory_space<vmem>>, vector<32x128xf32>
    %c0_4 = arith.constant 0 : index
    %c0_5 = arith.constant 0 : index
    %3 = vector.load %arg4[%c0_4, %c0_5] : memref<32x128xf32, #tpu.memory_space<vmem>>, vector<32x128xf32>
    %cst = arith.constant dense<0.000000e+00> : vector<16x128xf32>
    %4 = tpu.matmul %1, %2, %cst {dimension_numbers = #tpu.dot_dimension_numbers<[1], [0], [0], [1], [0, 0, 1, 1], [], []>} : vector<16x32xf32>, vector<32x128xf32>, vector<16x128xf32> -> vector<16x128xf32>
    %5 = vector.extract_strided_slice %1 {offsets = [8, 0], sizes = [8, 32], strides = [1, 1]} : vector<16x32xf32> to vector<8x32xf32>
    %cst_6 = arith.constant dense<0.000000e+00> : vector<8x128xf32>
    %6 = tpu.matmul %5, %3, %cst_6 {dimension_numbers = #tpu.dot_dimension_numbers<[1], [0], [0], [1], [0, 0, 1, 1], [], []>} : vector<8x32xf32>, vector<32x128xf32>, vector<8x128xf32> -> vector<8x128xf32>
    %7 = vector.extract_strided_slice %4 {offsets = [0, 0], sizes = [8, 128], strides = [1, 1]} : vector<16x128xf32> to vector<8x128xf32>
    %8 = arith.subf %7, %6 : vector<8x128xf32>
    %c0_7 = arith.constant 0 : index
    %c0_8 = arith.constant 0 : index
    %9 = vector.load %arg5[%c0_7, %c0_8] : memref<1x128xf32, #tpu.memory_space<vmem>>, vector<1x128xf32>
    %10 = vector.broadcast %9 : vector<1x128xf32> to vector<8x128xf32>
    %11 = arith.addf %8, %10 : vector<8x128xf32>
    %12 = vector.extract_strided_slice %4 {offsets = [8, 0], sizes = [8, 128], strides = [1, 1]} : vector<16x128xf32> to vector<8x128xf32>
    %13 = arith.addf %12, %6 : vector<8x128xf32>
    %c0_9 = arith.constant 0 : index
    %c0_10 = arith.constant 0 : index
    %14 = vector.load %arg6[%c0_9, %c0_10] : memref<1x128xf32, #tpu.memory_space<vmem>>, vector<1x128xf32>
    %15 = vector.broadcast %14 : vector<1x128xf32> to vector<8x128xf32>
    %16 = arith.addf %13, %15 : vector<8x128xf32>
    %c0_11 = arith.constant 0 : index
    %c0_12 = arith.constant 0 : index
    %c0_13 = arith.constant 0 : index
    %17 = vector.load %arg7[%c0_11, %c0_12, %c0_13] : memref<2x8x128xf32, #tpu.memory_space<vmem>>, vector<1x8x128xf32>
    %18 = vector.shape_cast %17 : vector<1x8x128xf32> to vector<8x128xf32>
    %19 = vector.shape_cast %11 : vector<8x128xf32> to vector<1x8x128xf32>
    tpu.vector_store %arg7[%c0_11, %c0_12, %c0_13], %19 {strides = array<i32>} : memref<2x8x128xf32, #tpu.memory_space<vmem>>, vector<1x8x128xf32>,
    %c1 = arith.constant 1 : index
    %c0_14 = arith.constant 0 : index
    %c0_15 = arith.constant 0 : index
    %20 = vector.load %arg7[%c1, %c0_14, %c0_15] : memref<2x8x128xf32, #tpu.memory_space<vmem>>, vector<1x8x128xf32>
    %21 = vector.shape_cast %20 : vector<1x8x128xf32> to vector<8x128xf32>
    %22 = vector.shape_cast %16 : vector<8x128xf32> to vector<1x8x128xf32>
    tpu.vector_store %arg7[%c1, %c0_14, %c0_15], %22 {strides = array<i32>} : memref<2x8x128xf32, #tpu.memory_space<vmem>>, vector<1x8x128xf32>,
    return
  }
  func.func @transform_0(%arg0: i32, %arg1: i32) -> (i32, i32, i32) {
    %c0_i32 = arith.constant 0 : i32
    %c0_i32_0 = arith.constant 0 : i32
    %c0_i32_1 = arith.constant 0 : i32
    return %c0_i32, %arg1, %c0_i32_0 : i32, i32, i32
  }
  func.func @transform_1(%arg0: i32, %arg1: i32) -> (i32, i32) {
    %c0_i32 = arith.constant 0 : i32
    %c0_i32_0 = arith.constant 0 : i32
    return %c0_i32, %arg0 : i32, i32
  }
  func.func @transform_2(%arg0: i32, %arg1: i32) -> (i32, i32) {
    %c0_i32 = arith.constant 0 : i32
    %c0_i32_0 = arith.constant 0 : i32
    return %c0_i32, %arg0 : i32, i32
  }
  func.func @transform_3(%arg0: i32, %arg1: i32) -> (i32, i32) {
    %c0_i32 = arith.constant 0 : i32
    %c0_i32_0 = arith.constant 0 : i32
    return %c0_i32, %arg0 : i32, i32
  }
  func.func @transform_4(%arg0: i32, %arg1: i32) -> (i32, i32) {
    %c0_i32 = arith.constant 0 : i32
    %c0_i32_0 = arith.constant 0 : i32
    return %c0_i32, %arg0 : i32, i32
  }
  func.func @transform_5(%arg0: i32, %arg1: i32) -> (i32, i32, i32) {
    %c0_i32 = arith.constant 0 : i32
    %c0_i32_0 = arith.constant 0 : i32
    return %c0_i32, %arg1, %arg0 : i32, i32, i32
  }
}

</mosaic_0001>

<bundles_post_ra>
// kernel: tpu_custom_call.1
= control target key start
LH: loop header
LB: loop body
LE: loop exit
PB: predicated region body
PF: predicated region fallthrough
CT: control target
= control target key end

     0   :  { %10 = vsyncpa [#allocation3], 0  ;;  %s533_s0 = inlined_call_operand.hbm [shape: f32[2,8,32], index: 0, kind: input, shape index: {}]   ;;  %s534_s1 = inlined_call_operand.hbm [shape: f32[32,128], index: 1, kind: input, shape index: {}]   ;;  %s535_s2 = inlined_call_operand.hbm [shape: f32[32,128], index: 2, kind: input, shape index: {}]   ;;  %s536_s3 = inlined_call_operand.vmem [shape: f32[1,128], index: 3, kind: input, shape index: {}]   ;;  %s537_s4 = inlined_call_operand.vmem [shape: f32[1,128], index: 4, kind: input, shape index: {}]   ;;  %s538_s5 = inlined_call_operand.hbm [shape: f32[2,8,128], index: 5, kind: output, shape index: {}]  }
   0x1   :  { %11 = vsyncpa [#allocation6], 0 }
   0x2   :  { %12 = vsyncpa [#allocation4], 0  ;;  %s418_s18 = smov [#allocation5]   ;;  %s419_s20 = smov [#allocation2]  }
   0x3   :  { %s30_s19 = sshll.u32 %s418_s18, 4  ;;  %s18_s21 = sshll.u32 %s419_s20, 4  ;;  %s31_s19 = int_to_ptr.vmem [resolvable:$true] %s30_s19  ;;  %s457_s21 = int_to_ptr.vmem [resolvable:$true] %s18_s21 }
   0x4   :  { %s324_s24 = scalar_lea.hbm %s534_s1, 512 }
   0x5   :  { %p325_p0 = scmp.ne.s32.totalorder %s534_s1, %s324_s24  ;;  %p328_p1 = scmp.lt.u32.totalorder %s324_s24, %s534_s1 }
   0x7   :  { %p330_p2 = pnand %p328_p1, %p325_p0 }
   0x9   :  { %333 = shalt.err (!%p330_p2)
}
   0xa   :  { %s334_s29 = scalar_lea.vmem %s31_s19, 512  ;;  %p339_p4 = scmp.lt.s32.totalorder %s31_s19, %s31_s19 }
   0xb   :  { %p335_p3 = scmp.ne.s32.totalorder %s31_s19, %s334_s29  ;;  %p340_p5 = scmp.lt.s32.totalorder %s334_s29, %s334_s29 }
   0xd   :  { %p341_p6 = por %p340_p5, %p339_p4 }
   0xf   :  { %p342_p7 = pnand %p341_p6, %p335_p3 }
  0x11   :  { %345 = shalt.err (!%p342_p7)
}
  0x12   :  { %s420_s30 = smov 128   ;;  %s421_s6 = smov 8  }
  0x13   :  { %36 = dma.hbm_to_vmem [thread:$0]  %s534_s1, 512, %s31_s19, [#allocation6], %s420_s30, %s420_s30, %s421_s6  }
  0x14   :  { %s346_s11 = scalar_lea.hbm %s533_s0, 256 }
  0x15   :  { %p347_p8 = scmp.ne.s32.totalorder %s533_s0, %s346_s11  ;;  %p350_p9 = scmp.lt.u32.totalorder %s346_s11, %s533_s0 }
  0x17   :  { %p352_p10 = pnand %p350_p9, %p347_p8 }
  0x19   :  { %355 = shalt.err (!%p352_p10)
}
  0x1a   :  { %s356_s16 = scalar_lea.vmem %s457_s21, 256  ;;  %p361_p12 = scmp.lt.s32.totalorder %s457_s21, %s457_s21 }
  0x1b   :  { %p357_p11 = scmp.ne.s32.totalorder %s457_s21, %s356_s16  ;;  %p362_p13 = scmp.lt.s32.totalorder %s356_s16, %s356_s16 }
  0x1d   :  { %p363_p0 = por %p362_p13, %p361_p12 }
  0x1f   :  { %p364_p1 = pnand %p363_p0, %p357_p11 }
  0x21   :  { %367 = shalt.err (!%p364_p1)
}
  0x22   :  { %24 = dma.hbm_to_vmem [thread:$0]  %s533_s0, 256, %s457_s21, [#allocation3], %s420_s30, %s420_s30, %s421_s6  }
  0x23   :  { %s422_s18 = smov [#allocation7]   ;;  %s368_s23 = scalar_lea.hbm %s535_s2, 512 }
  0x24   :  { %s42_s19 = sshll.u32 %s422_s18, 4  ;;  %p369_p2 = scmp.ne.s32.totalorder %s535_s2, %s368_s23  ;;  %s43_s19 = int_to_ptr.vmem [resolvable:$true] %s42_s19 }
  0x25   :  { %p372_p3 = scmp.lt.u32.totalorder %s368_s23, %s535_s2 }
  0x27   :  { %p374_p4 = pnand %p372_p3, %p369_p2 }
  0x29   :  { %377 = shalt.err (!%p374_p4)
}
  0x2a   :  { %s378_s28 = scalar_lea.vmem %s43_s19, 512  ;;  %p383_p6 = scmp.lt.s32.totalorder %s43_s19, %s43_s19 }
  0x2b   :  { %p379_p5 = scmp.ne.s32.totalorder %s43_s19, %s378_s28  ;;  %p384_p7 = scmp.lt.s32.totalorder %s378_s28, %s378_s28 }
  0x2d   :  { %p385_p8 = por %p384_p7, %p383_p6 }
  0x2f   :  { %p386_p9 = pnand %p385_p8, %p379_p5 }
  0x31   :  { %389 = shalt.err (!%p386_p9)
}
  0x32   :  { %48 = dma.hbm_to_vmem [thread:$0]  %s535_s2, 512, %s43_s19, [#allocation6], %s420_s30, %s420_s30, %s421_s6  }
  0x33   :  { %412 = dma.done.wait [#allocation3], 256  }
  0x34   :  { %413 = vsyncadd [#allocation3], 4294967040 }
  0x35   :  { %414 = dma.done.wait [#allocation6], 1024  }
  0x36   :  { %415 = vsyncadd [#allocation6], 4294966272  ;;  %v423_v0 = vmov 0.0|0.0   ;;  %vm424_vm0 = vmmov 0   ;;  %v425_v1 = vmov 0.0   ;;  %v64_v2 = vld [vmem:[#allocation5] sm:$0xff] }
  0x37   :  { %309 = vmatprep.subr.bf16.mxu1 %v423_v0  ;;  %298 = vmatprep.mubr.msk.f32.mxu1 %vm424_vm0, %v425_v1  ;;  %v65_v3 = vld [vmem:[#allocation5 + $0x8] sm:$0xff]  ;;  %v68_v4 = vld [vmem:[#allocation7] sm:$0xff]  ;;  %vm72_vm1 = vcmask 261120   ;;  %v66_v7 = vld [vmem:[#allocation5 + $0x10] sm:$0xff]  ;;  %s426_s9 = smov [#allocation8]  }
  0x38   :  { %v301_v5 = vpack.c.bf16 %v65_v3, %v64_v2  ;;  %v69_v6 = vld [vmem:[#allocation7 + $0x8] sm:$0xff]  ;;  %v67_v8 = vld [vmem:[#allocation5 + $0x18] sm:$0xff]  ;;  %v70_v11 = vld [vmem:[#allocation7 + $0x10] sm:$0xff]  ;;  %s250_s10 = sshll.u32 %s426_s9, 4  ;;  %s251_s10 = int_to_ptr.vmem [resolvable:$true] %s250_s10 }
  0x39   :  { %v310_v9 = vpack.c.bf16 %v69_v6, %v68_v4  ;;  %v305_v10 = vpack.c.bf16 %v67_v8, %v66_v7  ;;  %v71_v12 = vld [vmem:[#allocation7 + $0x18] sm:$0xff]  ;;  %v62_v13 = vld [vmem:[#allocation2] sm:$0xff]  ;;  %s390_s11 = scalar_lea.vmem %s251_s10, 256  ;;  %p395_p11 = scmp.lt.s32.totalorder %s251_s10, %s251_s10 }
  0x3a   :  { %302 = vmatprep.subr.bf16.mxu0 %v301_v5  ;;  %287 = vmatprep.mubr.msk.f32.mxu0 %vm72_vm1, %v62_v13  ;;  %v313_v14 = vpack.c.bf16 %v71_v12, %v70_v11  ;;  %v63_v15 = vld [vmem:[#allocation2 + $0x8] sm:$0xff]  ;;  %v267_v18 = vld [vmem:[%s537_s4] ss:$0 sm:$0xff]  ;;  %p391_p10 = scmp.ne.s32.totalorder %s251_s10, %s390_s11  ;;  %p396_p12 = scmp.lt.s32.totalorder %s390_s11, %s390_s11 }
  0x3b   :  { %304 = vmatpush3.bf16.msra.mxu0 %v301_v5  ;;  %311 = vmatpush3.bf16.msra.mxu1 %v310_v9  ;;  %v266_v21 = vld [vmem:[%s536_s3] ss:$0 sm:$0xff] }
  0x3c   :  { %306 = vmatprep.subr.bf16.mxu0 %v305_v10  ;;  %312 = vmatprep.subr.bf16.mxu1 %v423_v0  ;;  %p397_p13 = por %p396_p12, %p395_p11 }
  0x3e   :  { %p398_p0 = pnand %p397_p13, %p391_p10 }
  0x3f   :  { %308 = vmatpush3.bf16.msra.mxu0 %v305_v10  ;;  %314 = vmatpush3.bf16.msra.mxu1 %v313_v14 }
  0x42   :  { %288 = vmatmul.mubr.msk.f32.vlgmr.msra.gmra.mrb[0].mxu0 %vm72_vm1, %v63_v15  ;;  %299 = vmatmul.mubr.msk.f32.vlgmr.msra.gmra.mrb[0].mxu1 %vm72_vm1, %v63_v15 }
 0x115   :  { %v289_v16 = vpop.f32.mrb[0].mxu0  ;;  %v220_v17 = vpop.f32.mrb[0].mxu1 }
 0x116   :  { %v233_v19 = vadd.f32 %v289_v16, %v220_v17  ;;  %v145_v20 = vpop.f32.mrb[1].mxu0  ;;  %v300_v22 = vpop.f32.mrb[1].mxu1 }
 0x117   :  { %v224_v23 = vsub.f32 %v145_v20, %v220_v17 }
 0x118   :  { %v241_v24 = vadd.f32 %v267_v18, %v233_v19 }
 0x119   :  { %v232_v25 = vadd.f32 %v266_v21, %v224_v23 }
 0x11a   :  { %244 = vst [vmem:[#allocation8 + $0x8] sm:$0xff] %v241_v24 }
 0x11b   :  { %242 = vst [vmem:[#allocation8] sm:$0xff] %v232_v25 }
 0x11c   :  { %401 = shalt.err (!%p398_p0)
}
 0x11d   :  { %s402_s3 = scalar_lea.hbm %s538_s5, 256 }
 0x11e   :  { %p403_p1 = scmp.ne.s32.totalorder %s538_s5, %s402_s3  ;;  %p406_p2 = scmp.lt.u32.totalorder %s402_s3, %s538_s5 }
 0x120   :  { %p408_p3 = pnand %p406_p2, %p403_p1 }
 0x122   :  { %411 = shalt.err (!%p408_p3)
}
 0x123   :  { %256 = dma.vmem_to_hbm [thread:$0]  %s251_s10, 256, %s538_s5, [#allocation4], %s420_s30, %s420_s30, %s421_s6  }
 0x124   :  { %416 = dma.done.wait [#allocation4], 256  }
 0x125   :  { %417 = vsyncadd [#allocation4], 4294967040 }
 0x126   :  { %260 = vsyncpa [#allocation3], 1 }
 0x127   :  { %261 = vsyncpa [#allocation6], 1 }
 0x128   :  { %262 = vsyncpa [#allocation4], 1 }

</bundles_post_ra>
